<compile_context>
chip_gen: v6e
topology: v6e:2x2x1
jax: 0.10.0
libtpu: 0.0.40
codegen_flags: <defaults>
</compile_context>

<pallas_src>
import jax
import jax.numpy as jnp
from jax.experimental import pallas as pl
from jax.experimental.pallas import tpu as pltpu

_LANES = 128


def _dqn_mlp_kernel(x_ref, w1_ref, b1_ref, w2_ref, b2_ref, w3_ref, b3_ref, o_ref):
    """One batch tile, feature-major.

    x_ref: (F, tb)   -- batch in lanes
    wN_ref: PyTorch nn.Linear layout (out_features, in_features)
    bN_ref: (out_features, 1) float32 columns (broadcast along lanes)
    o_ref: (O, tb)
    """
    x = x_ref[...]
    h1 = jnp.dot(w1_ref[...], x, preferred_element_type=jnp.float32) + b1_ref[...]
    h1 = jnp.maximum(h1, 0.0)
    h2 = jnp.dot(w2_ref[...], h1.astype(w2_ref.dtype),
                 preferred_element_type=jnp.float32) + b2_ref[...]
    h2 = jnp.maximum(h2, 0.0)
    out = jnp.dot(w3_ref[...], h2.astype(w3_ref.dtype),
                  preferred_element_type=jnp.float32) + b3_ref[...]
    o_ref[...] = out.astype(o_ref.dtype)


def _mlp_xla(x, w1, b1, w2, b2, w3, b3):
    """Pure-JAX reference / small-batch fallback (PyTorch weight layout)."""
    h1 = jnp.maximum(x @ w1.T + b1, 0.0)
    h2 = jnp.maximum(h1 @ w2.T + b2, 0.0)
    return h2 @ w3.T + b3


def _round_up(a, m):
    return -(-a // m) * m


def dqn_simple_forward(x, w1, b1, w2, b2, w3, b3, *,
                       batch_block=32768, xla_fallback_batch=512, io_dtype=None):
    """Pallas implementation of DQN_Simple.forward.

    Args:
      x:  (B, 4) state batch (batch-major, as PyTorch passes it).
      w1: (24, 4)  b1: (24,)   -- nn.Linear.weight / .bias layout, no transpose needed.
      w2: (24, 24) b2: (24,)
      w3: (2, 24)  b3: (2,)
      batch_block: max lanes per grid step (multiple of 128).
      xla_fallback_batch: batches this small skip Pallas entirely.
      io_dtype: optional storage dtype for x / weights (e.g. jnp.bfloat16);
        accumulation and the returned dtype stay as x.dtype.
    Returns:
      (B, 2) Q-values, dtype of x.
    """
    B, F = x.shape
    H1, H2, O = w1.shape[0], w2.shape[0], w3.shape[0]
    assert w1.shape == (H1, F) and w2.shape == (H2, H1) and w3.shape == (O, H2)
    assert b1.shape == (H1,) and b2.shape == (H2,) and b3.shape == (O,)
    assert batch_block % _LANES == 0

    out_dtype = x.dtype

    # Online-inference path: a single pallas_call costs more than the whole MLP.
    if B <= xla_fallback_batch:
        return _mlp_xla(x, w1, b1, w2, b2, w3, b3).astype(out_dtype)

    if io_dtype is not None:
        x = x.astype(io_dtype)
        w1, w2, w3 = (w.astype(io_dtype) for w in (w1, w2, w3))

    # Batch-in-lanes: (B, F) -> (F, B). (Ideally the replay buffer stores
    # states feature-major so this wrapper transpose disappears.)
    x_t = x.T
    b1c = b1.astype(jnp.float32).reshape(H1, 1)
    b2c = b2.astype(jnp.float32).reshape(H2, 1)
    b3c = b3.astype(jnp.float32).reshape(O, 1)

    # Tile width: lane-aligned, as large as batch_block, and split into at
    # least 2 grid steps when possible so v7x megacore uses both TensorCores.
    if B <= batch_block:
        tb = _round_up(pl.cdiv(B, 2), _LANES) if B >= 2 * _LANES else B
    else:
        tb = batch_block
    grid = (pl.cdiv(B, tb),)

    resident = lambda i: (0, 0)  # weights/biases: same (only) block every step

    out_t = pl.pallas_call(
        _dqn_mlp_kernel,
        out_shape=jax.ShapeDtypeStruct((O, B), out_dtype),
        grid_spec=pltpu.PrefetchScalarGridSpec(
            num_scalar_prefetch=0,
            grid=grid,
            in_specs=[
                pl.BlockSpec((F, tb), lambda i: (0, i)),   # x (feature-major), tiled over lanes
                pl.BlockSpec((H1, F), resident),           # W1
                pl.BlockSpec((H1, 1), resident),           # b1
                pl.BlockSpec((H2, H1), resident),          # W2
                pl.BlockSpec((H2, 1), resident),           # b2
                pl.BlockSpec((O, H2), resident),           # W3
                pl.BlockSpec((O, 1), resident),            # b3
            ],
            out_specs=pl.BlockSpec((O, tb), lambda i: (0, i)),
        ),
        compiler_params=pltpu.CompilerParams(
            dimension_semantics=("parallel",),
        ),
    )(x_t, w1, b1c, w2, b2c, w3, b3c)

    return out_t.T


if __name__ == "__main__":
    key = jax.random.PRNGKey(0)
    keys = jax.random.split(key, 8)

    # Deterministic "trained" parameters in PyTorch nn.Linear layout (out, in).
    w1 = jax.random.normal(keys[1], (24, 4), dtype=jnp.float32) * 0.5
    b1 = jax.random.normal(keys[2], (24,), dtype=jnp.float32) * 0.1
    w2 = jax.random.normal(keys[3], (24, 24), dtype=jnp.float32) * 0.3
    b2 = jax.random.normal(keys[4], (24,), dtype=jnp.float32) * 0.1
    w3 = jax.random.normal(keys[5], (2, 24), dtype=jnp.float32) * 0.3
    b3 = jax.random.normal(keys[6], (2,), dtype=jnp.float32) * 0.1

    # 1) Small shape consistent with the module (CartPole state = 4, batch = 2).
    #    Force the Pallas path (this size would normally take the XLA fallback).
    B = 2
    x = jax.random.normal(keys[0], (B, 4), dtype=jnp.float32)
    y = dqn_simple_forward(x, w1, b1, w2, b2, w3, b3, xla_fallback_batch=0)
    y = jax.block_until_ready(y)
    ref = _mlp_xla(x, w1, b1, w2, b2, w3, b3)
    assert y.shape == (B, 2), (y.shape, (B, 2))
    assert y.dtype == x.dtype, (y.dtype, x.dtype)
    assert bool(jnp.allclose(y, ref, atol=1e-4, rtol=1e-4)), "small-batch MLP mismatch"

    # 2) Modest replay-sized batch (not a multiple of 128): exercises the tiled
    #    path -- 2 grid steps (one per v7x TensorCore) and a masked ragged tile.
    B2 = 1000
    x2 = jax.random.normal(keys[7], (B2, 4), dtype=jnp.float32)
    y2 = dqn_simple_forward(x2, w1, b1, w2, b2, w3, b3)
    y2 = jax.block_until_ready(y2)
    ref2 = _mlp_xla(x2, w1, b1, w2, b2, w3, b3)
    assert y2.shape == (B2, 2), (y2.shape, (B2, 2))
    assert bool(jnp.allclose(y2, ref2, atol=1e-4, rtol=1e-4)), "tiled MLP mismatch"

    # TODO(synk): remember/act/experience_replay (replay buffer, Adam, MSE
    # training loop, epsilon-greedy) are host-side training utilities, not part
    # of forward(); intentionally not lowered to Pallas.
    print("KERNEL_OK")
</pallas_src>

<mosaic_0001>
module attributes {stable_mosaic.version = 11 : i64} {
  func.func @_dqn_mlp_kernel(%arg0: i32, %arg1: memref<4x2xf32, #tpu.memory_space<vmem>>, %arg2: memref<24x4xf32, #tpu.memory_space<vmem>>, %arg3: memref<24x1xf32, #tpu.memory_space<vmem>>, %arg4: memref<24x24xf32, #tpu.memory_space<vmem>>, %arg5: memref<24x1xf32, #tpu.memory_space<vmem>>, %arg6: memref<2x24xf32, #tpu.memory_space<vmem>>, %arg7: memref<2x1xf32, #tpu.memory_space<vmem>>, %arg8: memref<2x2xf32, #tpu.memory_space<vmem>>) attributes {dimension_semantics = [#tpu.dimension_semantics<parallel>], iteration_bounds = array<i64: 1>, scalar_prefetch = 0 : i64, scratch_operands = 0 : i64, tpu.core_type = #tpu.core_type<tc>, window_params = [{transform_indices = @transform_0, window_bounds = array<i64: 4, 2>}, {pipeline_mode = #tpu.pipeline_mode<synchronous>, transform_indices = @transform_1, window_bounds = array<i64: 24, 4>}, {pipeline_mode = #tpu.pipeline_mode<synchronous>, transform_indices = @transform_2, window_bounds = array<i64: 24, 1>}, {pipeline_mode = #tpu.pipeline_mode<synchronous>, transform_indices = @transform_3, window_bounds = array<i64: 24, 24>}, {pipeline_mode = #tpu.pipeline_mode<synchronous>, transform_indices = @transform_4, window_bounds = array<i64: 24, 1>}, {pipeline_mode = #tpu.pipeline_mode<synchronous>, transform_indices = @transform_5, window_bounds = array<i64: 2, 24>}, {pipeline_mode = #tpu.pipeline_mode<synchronous>, transform_indices = @transform_6, window_bounds = array<i64: 2, 1>}, {transform_indices = @transform_7, window_bounds = array<i64: 2, 2>}]} {
    %c0 = arith.constant 0 : index
    %c0_0 = arith.constant 0 : index
    %0 = vector.load %arg1[%c0, %c0_0] : memref<4x2xf32, #tpu.memory_space<vmem>>, vector<4x2xf32>
    %c0_1 = arith.constant 0 : index
    %c0_2 = arith.constant 0 : index
    %1 = vector.load %arg2[%c0_1, %c0_2] : memref<24x4xf32, #tpu.memory_space<vmem>>, vector<24x4xf32>
    %cst = arith.constant dense<0.000000e+00> : vector<24x2xf32>
    %2 = tpu.matmul %1, %0, %cst {dimension_numbers = #tpu.dot_dimension_numbers<[1], [0], [0], [1], [0, 0, 1, 1], [], []>} : vector<24x4xf32>, vector<4x2xf32>, vector<24x2xf32> -> vector<24x2xf32>
    %c0_3 = arith.constant 0 : index
    %c0_4 = arith.constant 0 : index
    %3 = vector.load %arg3[%c0_3, %c0_4] : memref<24x1xf32, #tpu.memory_space<vmem>>, vector<24x1xf32>
    %4 = vector.broadcast %3 : vector<24x1xf32> to vector<24x2xf32>
    %5 = arith.addf %2, %4 : vector<24x2xf32>
    %cst_5 = arith.constant 0.000000e+00 : f32
    %6 = vector.broadcast %cst_5 : f32 to vector<24x2xf32>
    %7 = arith.maximumf %5, %6 : vector<24x2xf32>
    %c0_6 = arith.constant 0 : index
    %c0_7 = arith.constant 0 : index
    %8 = vector.load %arg4[%c0_6, %c0_7] : memref<24x24xf32, #tpu.memory_space<vmem>>, vector<24x24xf32>
    %cst_8 = arith.constant dense<0.000000e+00> : vector<24x2xf32>
    %9 = tpu.matmul %8, %7, %cst_8 {dimension_numbers = #tpu.dot_dimension_numbers<[1], [0], [0], [1], [0, 0, 1, 1], [], []>} : vector<24x24xf32>, vector<24x2xf32>, vector<24x2xf32> -> vector<24x2xf32>
    %c0_9 = arith.constant 0 : index
    %c0_10 = arith.constant 0 : index
    %10 = vector.load %arg5[%c0_9, %c0_10] : memref<24x1xf32, #tpu.memory_space<vmem>>, vector<24x1xf32>
    %11 = vector.broadcast %10 : vector<24x1xf32> to vector<24x2xf32>
    %12 = arith.addf %9, %11 : vector<24x2xf32>
    %cst_11 = arith.constant 0.000000e+00 : f32
    %13 = vector.broadcast %cst_11 : f32 to vector<24x2xf32>
    %14 = arith.maximumf %12, %13 : vector<24x2xf32>
    %c0_12 = arith.constant 0 : index
    %c0_13 = arith.constant 0 : index
    %15 = vector.load %arg6[%c0_12, %c0_13] : memref<2x24xf32, #tpu.memory_space<vmem>>, vector<2x24xf32>
    %cst_14 = arith.constant dense<0.000000e+00> : vector<2x2xf32>
    %16 = tpu.matmul %15, %14, %cst_14 {dimension_numbers = #tpu.dot_dimension_numbers<[1], [0], [0], [1], [0, 0, 1, 1], [], []>} : vector<2x24xf32>, vector<24x2xf32>, vector<2x2xf32> -> vector<2x2xf32>
    %c0_15 = arith.constant 0 : index
    %c0_16 = arith.constant 0 : index
    %17 = vector.load %arg7[%c0_15, %c0_16] : memref<2x1xf32, #tpu.memory_space<vmem>>, vector<2x1xf32>
    %18 = vector.broadcast %17 : vector<2x1xf32> to vector<2x2xf32>
    %19 = arith.addf %16, %18 : vector<2x2xf32>
    %c0_17 = arith.constant 0 : index
    %c0_18 = arith.constant 0 : index
    %20 = vector.load %arg8[%c0_17, %c0_18] : memref<2x2xf32, #tpu.memory_space<vmem>>, vector<2x2xf32>
    tpu.vector_store %arg8[%c0_17, %c0_18], %19 {strides = array<i32>} : memref<2x2xf32, #tpu.memory_space<vmem>>, vector<2x2xf32>,
    return
  }
  func.func @transform_0(%arg0: i32) -> (i32, i32) {
    %c0_i32 = arith.constant 0 : i32
    %c0_i32_0 = arith.constant 0 : i32
    return %c0_i32, %arg0 : i32, i32
  }
  func.func @transform_1(%arg0: i32) -> (i32, i32) {
    %c0_i32 = arith.constant 0 : i32
    %c0_i32_0 = arith.constant 0 : i32
    %c0_i32_1 = arith.constant 0 : i32
    return %c0_i32, %c0_i32_0 : i32, i32
  }
  func.func @transform_2(%arg0: i32) -> (i32, i32) {
    %c0_i32 = arith.constant 0 : i32
    %c0_i32_0 = arith.constant 0 : i32
    %c0_i32_1 = arith.constant 0 : i32
    return %c0_i32, %c0_i32_0 : i32, i32
  }
  func.func @transform_3(%arg0: i32) -> (i32, i32) {
    %c0_i32 = arith.constant 0 : i32
    %c0_i32_0 = arith.constant 0 : i32
    %c0_i32_1 = arith.constant 0 : i32
    return %c0_i32, %c0_i32_0 : i32, i32
  }
  func.func @transform_4(%arg0: i32) -> (i32, i32) {
    %c0_i32 = arith.constant 0 : i32
    %c0_i32_0 = arith.constant 0 : i32
    %c0_i32_1 = arith.constant 0 : i32
    return %c0_i32, %c0_i32_0 : i32, i32
  }
  func.func @transform_5(%arg0: i32) -> (i32, i32) {
    %c0_i32 = arith.constant 0 : i32
    %c0_i32_0 = arith.constant 0 : i32
    %c0_i32_1 = arith.constant 0 : i32
    return %c0_i32, %c0_i32_0 : i32, i32
  }
  func.func @transform_6(%arg0: i32) -> (i32, i32) {
    %c0_i32 = arith.constant 0 : i32
    %c0_i32_0 = arith.constant 0 : i32
    %c0_i32_1 = arith.constant 0 : i32
    return %c0_i32, %c0_i32_0 : i32, i32
  }
  func.func @transform_7(%arg0: i32) -> (i32, i32) {
    %c0_i32 = arith.constant 0 : i32
    %c0_i32_0 = arith.constant 0 : i32
    return %c0_i32, %arg0 : i32, i32
  }
}

</mosaic_0001>

<bundles_post_ra>
// kernel: tpu_custom_call.1
= control target key start
LH: loop header
LB: loop body
LE: loop exit
PB: predicated region body
PF: predicated region fallthrough
CT: control target
= control target key end

     0   :  { %vm59_vm0 = vcmask 1043456   ;;  %v441_v2 = vmov 0.0   ;;  %vm442_vm1 = vmmov 0   ;;  %vm49_vm2 = vcmask 31744   ;;  %s561_s0 = inlined_call_operand.vmem [shape: f32[4,2], index: 0, kind: input, shape index: {}]   ;;  %s562_s1 = inlined_call_operand.vmem [shape: f32[24,4], index: 1, kind: input, shape index: {}]   ;;  %s563_s2 = inlined_call_operand.vmem [shape: f32[24,1], index: 2, kind: input, shape index: {}]   ;;  %s564_s3 = inlined_call_operand.vmem [shape: f32[24,24], index: 3, kind: input, shape index: {}]   ;;  %s565_s4 = inlined_call_operand.vmem [shape: f32[24,1], index: 4, kind: input, shape index: {}]   ;;  %s566_s5 = inlined_call_operand.vmem [shape: f32[2,24], index: 5, kind: input, shape index: {}]   ;;  %s567_s6 = inlined_call_operand.vmem [shape: f32[2,1], index: 6, kind: input, shape index: {}]   ;;  %s568_s7 = inlined_call_operand.hbm [shape: f32[2,2], index: 7, kind: output, shape index: {}]  }
   0x1   :  { %v27_v0 = vld [vmem:[%s561_s0] sm:$0xf]  ;;  %378 = vmatprep.subr.mxu0 %v441_v2  ;;  %380 = vmatprep.mubr.msk.f32.mxu0 %vm442_vm1, %v441_v2  ;;  %v33_v3 = vld [vmem:[%s563_s2 + $0x10] sm:$0xff]  ;;  %v443_v4 = vmov 0   ;;  %v29_v6 = vld [vmem:[%s562_s1 + $0x8] sm:$0xff] }
   0x2   :  { %v28_v1 = vld [vmem:[%s562_s1] sm:$0xff]  ;;  %379 = vmatpush3.msk.msra.mxu0 %vm59_vm0, %v27_v0  ;;  %417 = vset.pattern.permute.xlu0 %v443_v4  ;;  %v32_v7 = vld [vmem:[%s563_s2 + $0x8] sm:$0xff] }
   0x3   :  { %v31_v5 = vld [vmem:[%s563_s2] sm:$0xff]  ;;  %381 = vmatmul.mubr.msk.f32.vlgmr.msra.gmra.mxu0 %vm49_vm2, %v28_v1  ;;  %46 = vperm.xlu0 %417, %v33_v3  }
   0x4   :  { %383 = vmatprep.mubr.msk.f32.mxu0 %vm442_vm1, %v441_v2  ;;  %418 = vset.pattern.permute.xlu1 %v443_v4 }
   0x5   :  { %12 = vsyncpa [#allocation3], 0  ;;  %36 = vperm.xlu1 %418, %v31_v5   ;;  %389 = vmatprep.subr.mxu1 %v441_v2  ;;  %v151_v8 = vld [vmem:[%s565_s4 + $0x10] sm:$0xff]  ;;  %v150_v10 = vld [vmem:[%s565_s4 + $0x8] sm:$0xff]  ;;  %vm167_vm3 = vcmask 195584   ;;  %s444_s25 = smov [#allocation2]  }
   0x6   :  { %395 = vmatprep.mubr.msk.f32.mxu1 %vm442_vm1, %v441_v2  ;;  %404 = vmatprep.subr.mxu0 %v441_v2  ;;  %v30_v9 = vld [vmem:[%s562_s1 + $0x10] sm:$0xff]  ;;  %v149_v11 = vld [vmem:[%s565_s4] sm:$0xff]  ;;  %v147_v29 = vld [vmem:[%s564_s3 + $0x8] sm:$0xff]  ;;  %s348_s26 = sshll.u32 %s444_s25, 4  ;;  %vm340_vm4 = vcmask 9216   ;;  %s349_s26 = int_to_ptr.vmem [resolvable:$true] %s348_s26 }
   0x7   :  { %384 = vmatmul.mubr.msk.f32.gmra.mxu0 %vm49_vm2, %v29_v6  ;;  %41 = vperm.xlu0 %417, %v32_v7   ;;  %v261_v12 = vld [vmem:[%s567_s6] sm:$0x3]  ;;  %v148_v30 = vld [vmem:[%s564_s3 + $0x10] sm:$0xff]  ;;  %s419_s27 = scalar_lea.vmem %s349_s26, 32  ;;  %p424_p1 = scmp.lt.s32.totalorder %s349_s26, %s349_s26 }
   0x8   :  { %386 = vmatprep.mubr.msk.f32.mxu0 %vm442_vm1, %v441_v2  ;;  %v146_v28 = vld [vmem:[%s564_s3] sm:$0xff]  ;;  %p420_p0 = scmp.ne.s32.totalorder %s349_s26, %s419_s27  ;;  %p425_p2 = scmp.lt.s32.totalorder %s419_s27, %s419_s27 }
   0x9   :  { %164 = vperm.xlu1 %418, %v151_v8   ;;  %v260_v46 = vld [vmem:[%s566_s5] sm:$0x3] }
   0xa   :  { %p426_p3 = por %p425_p2, %p424_p1 }
   0xb   :  { %387 = vmatmul.mubr.msk.f32.gmra.mxu0 %vm49_vm2, %v30_v9  ;;  %159 = vperm.xlu0 %417, %v150_v10  }
   0xc   :  { %410 = vmatprep.mubr.msk.f32.mxu0 %vm442_vm1, %v441_v2  ;;  %p427_p4 = pnand %p426_p3, %p420_p0 }
   0xd   :  { %154 = vperm.xlu1 %418, %v149_v11  }
   0xf   :  { %264 = vperm.xlu0 %417, %v261_v12  }
  0x7e   :  { %v47_v14 = vpop.permute.xlu0 %46 }
  0x80   :  { %v37_v18 = vpop.permute.xlu1 %36 }
  0x82   :  { %v42_v19 = vpop.permute.xlu0 %41 }
  0x84   :  { %v165_v33 = vpop.permute.xlu1 %164 }
  0x86   :  { %v160_v36 = vpop.permute.xlu0 %159 }
  0x88   :  { %v155_v40 = vpop.permute.xlu1 %154 }
  0x8a   :  { %v265_v47 = vpop.permute.xlu0 %264 }
  0xc3   :  { %v129_v13 = vpop.f32.mrf.mxu0 }
  0xc4   :  { %v130_v24 = vadd.f32 %v129_v13, %v37_v18 }
  0xc5   :  { %v382_v15 = vpop.f32.mrf.mxu0 }
  0xc6   :  { %v143_v27 = vmax.f32 %v130_v24, 0.0 }
  0xc7   :  { %v134_v16 = vpop.f32.mrf.mxu0 }
  0xc8   :  { %v135_v21 = vadd.f32 %v134_v16, %v42_v19 }
  0xc9   :  { %v385_v17 = vpop.f32.mrf.mxu0 }
  0xca   :  { %v144_v26 = vmax.f32 %v135_v21, 0.0 }
  0xcb   :  { %v139_v20 = vpop.f32.mrf.mxu0 }
  0xcc   :  { %v140_v22 = vadd.f32 %v139_v20, %v47_v14 }
  0xcd   :  { %v388_v23 = vpop.f32.mrf.mxu0 }
  0xce   :  { %v145_v25 = vmax.f32 %v140_v22, 0.0 }
  0xd0   :  { %390 = vmatpush3.msra.mxu1 %v145_v25 }
  0xd1   :  { %391 = vmatprep.subr.mxu1 %v441_v2 }
  0xd2   :  { %392 = vmatpush3.msra.mxu1 %v144_v26 }
  0xd3   :  { %393 = vmatprep.subr.mxu1 %v441_v2 }
  0xd4   :  { %394 = vmatpush3.msra.mxu1 %v143_v27 }
  0xd5   :  { %396 = vmatmul.mubr.msk.f32.vlgmr.msra.gmra.mxu1 %vm167_vm3, %v146_v28 }
  0xd6   :  { %398 = vmatprep.mubr.msk.f32.mxu1 %vm442_vm1, %v441_v2 }
  0xd9   :  { %399 = vmatmul.mubr.msk.f32.gmra.mxu1 %vm167_vm3, %v147_v29 }
  0xda   :  { %401 = vmatprep.mubr.msk.f32.mxu1 %vm442_vm1, %v441_v2 }
  0xdd   :  { %402 = vmatmul.mubr.msk.f32.gmra.mxu1 %vm167_vm3, %v148_v30 }
 0x195   :  { %v243_v31 = vpop.f32.mrf.mxu1 }
 0x196   :  { %v244_v42 = vadd.f32 %v243_v31, %v155_v40 }
 0x197   :  { %v397_v32 = vpop.f32.mrf.mxu1 }
 0x198   :  { %v257_v45 = vmax.f32 %v244_v42, 0.0 }
 0x199   :  { %v248_v34 = vpop.f32.mrf.mxu1 }
 0x19a   :  { %v249_v38 = vadd.f32 %v248_v34, %v160_v36 }
 0x19b   :  { %v400_v35 = vpop.f32.mrf.mxu1 }
 0x19c   :  { %v258_v44 = vmax.f32 %v249_v38, 0.0 }
 0x19d   :  { %v253_v37 = vpop.f32.mrf.mxu1 }
 0x19e   :  { %v254_v39 = vadd.f32 %v253_v37, %v165_v33 }
 0x19f   :  { %v403_v41 = vpop.f32.mrf.mxu1 }
 0x1a0   :  { %v259_v43 = vmax.f32 %v254_v39, 0.0 }
 0x1a2   :  { %405 = vmatpush3.msra.mxu0 %v259_v43 }
 0x1a3   :  { %406 = vmatprep.subr.mxu0 %v441_v2 }
 0x1a4   :  { %407 = vmatpush3.msra.mxu0 %v258_v44 }
 0x1a5   :  { %408 = vmatprep.subr.mxu0 %v441_v2 }
 0x1a6   :  { %409 = vmatpush3.msra.mxu0 %v257_v45 }
 0x1a7   :  { %411 = vmatmul.mubr.msk.f32.vlgmr.msra.gmra.mxu0 %vm167_vm3, %v260_v46 }
 0x267   :  { %v336_v48 = vpop.f32.mrf.mxu0 }
 0x268   :  { %v337_v49 = vadd.f32 %v336_v48, %v265_v47 }
 0x269   :  { %v412_v50 = vpop.f32.mrf.mxu0 }
 0x26a   :  { %341 = vst.msk [vmem:[#allocation2] sm:$0x3] %vm340_vm4, %v337_v49 }
 0x26b   :  { %430 = shalt.err (!%p427_p4)
}
 0x26c   :  { %351 = dma.vmem_to_hbm [thread:$0]  %s349_s26, 32, %s568_s7, [#allocation3]  }
 0x26d   :  { %439 = dma.done.wait [#allocation3], 32  }
 0x26e   :  { %440 = vsyncadd [#allocation3], 4294967264 }
 0x26f   :  { %355 = vsyncpa [#allocation3], 1 }

</bundles_post_ra>
